<compile_context>
chip_gen: v7x
topology: tpu7x:2x2x1
jax: 0.10.0
libtpu: 0.0.40
codegen_flags: <defaults>
</compile_context>

<pallas_src>
import jax
import jax.numpy as jnp
from jax import lax
from jax.experimental import pallas as pl
from jax.experimental.pallas import tpu as pltpu


def dkc_kernel(gx_ref, whh_ref, wout_ref, bout_ref, out_ref, hsum_sc):
    """One T-chunk of the DKC forward.

    gx_ref   : (B, Tc, 4H) pre-projected gates (emb @ W_ih^T + b_ih + b_hh),
               gate columns reordered to (i, f, o, g); axis 0 = LSTM time.
    whh_ref  : (H, 4H)     recurrent weight, columns reordered to (i, f, o, g)
    wout_ref : (H, Opad)   linear head, lane-padded to a multiple of 128
    bout_ref : (1, Opad)
    out_ref  : (1, B, Opad) chunk partial: out[t] = (sum_j h_t[j])@W + Tc*b
    hsum_sc  : (B, H)      per-time-step row-sums of h
    """
    nsteps = gx_ref.shape[0]          # B (time axis)
    Tc = gx_ref.shape[1]              # chunk of the LSTM batch axis
    H = whh_ref.shape[0]

    def step(t, carry):
        h, c = carry                                          # (Tc, H) f32
        gates = gx_ref[t] + jnp.dot(h, whh_ref[...],
                                    preferred_element_type=jnp.float32)
        sig = jax.nn.sigmoid(gates[:, 0:3 * H])               # i | f | o
        i = sig[:, 0:H]
        f = sig[:, H:2 * H]
        o = sig[:, 2 * H:3 * H]
        g = jnp.tanh(gates[:, 3 * H:4 * H])
        c_new = f * c + i * g
        h_new = o * jnp.tanh(c_new)
        # Head is hoisted out of the loop: only keep sum over the T rows.
        hsum_sc[t, :] = jnp.sum(h_new, axis=0)
        return (h_new, c_new)

    h0 = jnp.zeros((Tc, H), jnp.float32)
    c0 = jnp.zeros((Tc, H), jnp.float32)
    lax.fori_loop(0, nsteps, step, (h0, c0), unroll=True)

    # sum_j (h_t[j] @ W_out + b_out) == (sum_j h_t[j]) @ W_out + Tc * b_out
    out_ref[0] = (jnp.dot(hsum_sc[...], wout_ref[...],
                          preferred_element_type=jnp.float32)
                  + jnp.float32(Tc) * bout_ref[...])


def _choose_t_chunk(T, target=256):
    """Largest T-chunk <= target that is a multiple of 8 and divides T."""
    if T <= target:
        return T
    for c in range(target - target % 8, 7, -8):
        if T % c == 0:
            return c
    return T


def dkc_forward(comment, emb_table, w_ih, w_hh, b_ih, b_hh, w_out, b_out):
    """comment: (B, T) int32 token ids. Returns (B, output_number) float32."""
    B, T = comment.shape
    H = w_hh.shape[1]
    O = w_out.shape[0]
    O_pad = ((O + 127) // 128) * 128

    # Reorder gate columns from torch's (i, f, g, o) to (i, f, o, g) so the
    # kernel uses one contiguous sigmoid slab and one tanh slab per step.
    perm = jnp.concatenate([jnp.arange(0, 2 * H),
                            jnp.arange(3 * H, 4 * H),
                            jnp.arange(2 * H, 3 * H)])
    wih_t = w_ih.T[:, perm]                               # (E, 4H)
    whh_t = w_hh.T[:, perm]                               # (H, 4H)
    bias = (b_ih + b_hh)[perm]                            # (4H,)

    # Fold input projection + bias into the embedding table (exact algebra):
    # gates_x[b, t] = emb[comment[b, t]] @ W_ih^T + b_ih + b_hh
    proj_table = emb_table @ wih_t + bias[None, :]        # (VOCAB, 4H)
    gates_x = jnp.take(proj_table, comment, axis=0)       # (B, T, 4H)

    # Lane-pad the head so the final store is lane-dense (unmasked vst).
    wout_pad = jnp.zeros((H, O_pad), jnp.float32).at[:, :O].set(w_out.T)
    bout_pad = jnp.zeros((1, O_pad), jnp.float32).at[:, :O].set(b_out[None, :])

    Tc = _choose_t_chunk(T)
    n_chunks = T // Tc

    # TODO(synk): for v6e/v7x, gates_x / whh could be cast to bf16 for the MXU
    # (keeping f32 accumulation); kept f32 here for bitwise-tight verification.
    partial = pl.pallas_call(
        dkc_kernel,
        out_shape=jax.ShapeDtypeStruct((n_chunks, B, O_pad), jnp.float32),
        grid=(n_chunks,),
        in_specs=[
            pl.BlockSpec((B, Tc, 4 * H), lambda c: (0, c, 0)),   # streamed
            pl.BlockSpec((H, 4 * H), lambda c: (0, 0)),          # resident
            pl.BlockSpec((H, O_pad), lambda c: (0, 0)),          # resident
            pl.BlockSpec((1, O_pad), lambda c: (0, 0)),          # resident
        ],
        out_specs=pl.BlockSpec((1, B, O_pad), lambda c: (c, 0, 0)),
        scratch_shapes=[pltpu.VMEM((B, H), jnp.float32)],
        compiler_params=pltpu.CompilerParams(
            dimension_semantics=("parallel",)),
    )(gates_x, whh_t, wout_pad, bout_pad)

    # Chunks along T are independent LSTM "batches"; their partials add.
    return jnp.sum(partial, axis=0)[:, :O]


def dkc_reference(comment, emb_table, w_ih, w_hh, b_ih, b_hh, w_out, b_out):
    """Pure-JAX reference matching torch semantics (for verification)."""
    B, T = comment.shape
    H = w_hh.shape[1]
    embed = jnp.take(emb_table, comment, axis=0)           # (B, T, E)
    h = jnp.zeros((T, H), jnp.float32)
    c = jnp.zeros((T, H), jnp.float32)
    outs = []
    for t in range(B):
        gates = embed[t] @ w_ih.T + h @ w_hh.T + b_ih + b_hh
        i = jax.nn.sigmoid(gates[:, 0:H])
        f = jax.nn.sigmoid(gates[:, H:2 * H])
        g = jnp.tanh(gates[:, 2 * H:3 * H])
        o = jax.nn.sigmoid(gates[:, 3 * H:4 * H])
        c = f * c + i * g
        h = o * jnp.tanh(c)
        logits = h @ w_out.T + b_out                       # (T, O)
        outs.append(jnp.sum(logits, axis=0))
    return jnp.stack(outs, axis=0)                         # (B, O)


if __name__ == "__main__":
    # Small, deterministic configuration consistent with the module's __init__.
    VOCAB = 50          # len(vocabs)
    E = 32              # embedding_dim
    H = 32              # hidden_dim
    O = 4               # output_number
    B = 2               # number of comments (LSTM time axis per torch code)
    T = 8               # sequence length (LSTM batch axis per torch code)

    key = jax.random.PRNGKey(0)
    k = jax.random.split(key, 8)

    comment = jax.random.randint(k[0], (B, T), 0, VOCAB, dtype=jnp.int32)
    emb_table = jax.random.normal(k[1], (VOCAB, E), jnp.float32) * 0.1
    w_ih = jax.random.normal(k[2], (4 * H, E), jnp.float32) * 0.1
    w_hh = jax.random.normal(k[3], (4 * H, H), jnp.float32) * 0.1
    b_ih = jax.random.normal(k[4], (4 * H,), jnp.float32) * 0.1
    b_hh = jax.random.normal(k[5], (4 * H,), jnp.float32) * 0.1
    w_out = jax.random.normal(k[6], (O, H), jnp.float32) * 0.1
    b_out = jax.random.normal(k[7], (O,), jnp.float32) * 0.1

    out = dkc_forward(comment, emb_table, w_ih, w_hh, b_ih, b_hh, w_out, b_out)
    out = jax.block_until_ready(out)

    ref = dkc_reference(comment, emb_table, w_ih, w_hh, b_ih, b_hh,
                        w_out, b_out)
    assert out.shape == (B, O)
    assert jnp.allclose(out, ref, atol=1e-4, rtol=1e-4), (out, ref)

    print("KERNEL_OK")
</pallas_src>

<mosaic_0001>
module attributes {stable_mosaic.version = 11 : i64} {
  func.func @dkc_kernel(%arg0: i32, %arg1: memref<2x8x128xf32, #tpu.memory_space<vmem>>, %arg2: memref<32x128xf32, #tpu.memory_space<vmem>>, %arg3: memref<32x128xf32, #tpu.memory_space<vmem>>, %arg4: memref<1x128xf32, #tpu.memory_space<vmem>>, %arg5: memref<1x2x128xf32, #tpu.memory_space<vmem>>, %arg6: memref<2x32xf32, #tpu.memory_space<vmem>>) attributes {dimension_semantics = [#tpu.dimension_semantics<parallel>], iteration_bounds = array<i64: 1>, scalar_prefetch = 0 : i64, scratch_operands = 1 : i64, tpu.core_type = #tpu.core_type<tc>, window_params = [{transform_indices = @transform_0, window_bounds = array<i64: 2, 8, 128>}, {pipeline_mode = #tpu.pipeline_mode<synchronous>, transform_indices = @transform_1, window_bounds = array<i64: 32, 128>}, {pipeline_mode = #tpu.pipeline_mode<synchronous>, transform_indices = @transform_2, window_bounds = array<i64: 32, 128>}, {pipeline_mode = #tpu.pipeline_mode<synchronous>, transform_indices = @transform_3, window_bounds = array<i64: 1, 128>}, {transform_indices = @transform_4, window_bounds = array<i64: 1, 2, 128>}]} {
    %cst = arith.constant 0.000000e+00 : f32
    %0 = vector.broadcast %cst : f32 to vector<8x32xf32>
    %cst_0 = arith.constant 0.000000e+00 : f32
    %1 = vector.broadcast %cst_0 : f32 to vector<8x32xf32>
    %c0_i32 = arith.constant 0 : i32
    %2 = arith.index_cast %c0_i32 : i32 to index
    %c0 = arith.constant 0 : index
    %c0_1 = arith.constant 0 : index
    %3 = vector.load %arg1[%2, %c0, %c0_1] : memref<2x8x128xf32, #tpu.memory_space<vmem>>, vector<1x8x128xf32>
    %4 = vector.shape_cast %3 : vector<1x8x128xf32> to vector<8x128xf32>
    %c0_2 = arith.constant 0 : index
    %c0_3 = arith.constant 0 : index
    %5 = vector.load %arg2[%c0_2, %c0_3] : memref<32x128xf32, #tpu.memory_space<vmem>>, vector<32x128xf32>
    %cst_4 = arith.constant dense<0.000000e+00> : vector<8x128xf32>
    %6 = tpu.matmul %0, %5, %cst_4 {dimension_numbers = #tpu.dot_dimension_numbers<[1], [0], [0], [1], [0, 0, 1, 1], [], []>} : vector<8x32xf32>, vector<32x128xf32>, vector<8x128xf32> -> vector<8x128xf32>
    %7 = arith.addf %4, %6 : vector<8x128xf32>
    %8 = vector.extract_strided_slice %7 {offsets = [0, 0], sizes = [8, 96], strides = [1, 1]} : vector<8x128xf32> to vector<8x96xf32>
    %9 = arith.negf %8 : vector<8x96xf32>
    %10 = math.exp %9 : vector<8x96xf32>
    %cst_5 = arith.constant 1.000000e+00 : f32
    %11 = vector.broadcast %cst_5 : f32 to vector<8x96xf32>
    %12 = arith.addf %11, %10 : vector<8x96xf32>
    %13 = arith.divf %11, %12 : vector<8x96xf32>
    %14 = vector.extract_strided_slice %13 {offsets = [0, 0], sizes = [8, 32], strides = [1, 1]} : vector<8x96xf32> to vector<8x32xf32>
    %15 = vector.extract_strided_slice %13 {offsets = [0, 32], sizes = [8, 32], strides = [1, 1]} : vector<8x96xf32> to vector<8x32xf32>
    %16 = vector.extract_strided_slice %13 {offsets = [0, 64], sizes = [8, 32], strides = [1, 1]} : vector<8x96xf32> to vector<8x32xf32>
    %17 = vector.extract_strided_slice %7 {offsets = [0, 96], sizes = [8, 32], strides = [1, 1]} : vector<8x128xf32> to vector<8x32xf32>
    %18 = math.tanh %17 : vector<8x32xf32>
    %19 = arith.mulf %15, %1 : vector<8x32xf32>
    %20 = arith.mulf %14, %18 : vector<8x32xf32>
    %21 = arith.addf %19, %20 : vector<8x32xf32>
    %22 = math.tanh %21 : vector<8x32xf32>
    %23 = arith.mulf %16, %22 : vector<8x32xf32>
    %cst_6 = arith.constant dense<0.000000e+00> : vector<32xf32>
    %24 = vector.multi_reduction <add>, %23, %cst_6 [0] : vector<8x32xf32> to vector<32xf32>
    %25 = arith.index_cast %c0_i32 : i32 to index
    %c0_7 = arith.constant 0 : index
    %26 = vector.load %arg6[%25, %c0_7] : memref<2x32xf32, #tpu.memory_space<vmem>>, vector<1x32xf32>
    %27 = vector.shape_cast %26 : vector<1x32xf32> to vector<32xf32>
    %28 = vector.shape_cast %24 : vector<32xf32> to vector<1x32xf32>
    tpu.vector_store %arg6[%25, %c0_7], %28 {strides = array<i32>} : memref<2x32xf32, #tpu.memory_space<vmem>>, vector<1x32xf32>,
    %c1_i32 = arith.constant 1 : i32
    %29 = arith.index_cast %c1_i32 : i32 to index
    %c0_8 = arith.constant 0 : index
    %c0_9 = arith.constant 0 : index
    %30 = vector.load %arg1[%29, %c0_8, %c0_9] : memref<2x8x128xf32, #tpu.memory_space<vmem>>, vector<1x8x128xf32>
    %31 = vector.shape_cast %30 : vector<1x8x128xf32> to vector<8x128xf32>
    %c0_10 = arith.constant 0 : index
    %c0_11 = arith.constant 0 : index
    %32 = vector.load %arg2[%c0_10, %c0_11] : memref<32x128xf32, #tpu.memory_space<vmem>>, vector<32x128xf32>
    %cst_12 = arith.constant dense<0.000000e+00> : vector<8x128xf32>
    %33 = tpu.matmul %23, %32, %cst_12 {dimension_numbers = #tpu.dot_dimension_numbers<[1], [0], [0], [1], [0, 0, 1, 1], [], []>} : vector<8x32xf32>, vector<32x128xf32>, vector<8x128xf32> -> vector<8x128xf32>
    %34 = arith.addf %31, %33 : vector<8x128xf32>
    %35 = vector.extract_strided_slice %34 {offsets = [0, 0], sizes = [8, 96], strides = [1, 1]} : vector<8x128xf32> to vector<8x96xf32>
    %36 = arith.negf %35 : vector<8x96xf32>
    %37 = math.exp %36 : vector<8x96xf32>
    %cst_13 = arith.constant 1.000000e+00 : f32
    %38 = vector.broadcast %cst_13 : f32 to vector<8x96xf32>
    %39 = arith.addf %38, %37 : vector<8x96xf32>
    %40 = arith.divf %38, %39 : vector<8x96xf32>
    %41 = vector.extract_strided_slice %40 {offsets = [0, 0], sizes = [8, 32], strides = [1, 1]} : vector<8x96xf32> to vector<8x32xf32>
    %42 = vector.extract_strided_slice %40 {offsets = [0, 32], sizes = [8, 32], strides = [1, 1]} : vector<8x96xf32> to vector<8x32xf32>
    %43 = vector.extract_strided_slice %40 {offsets = [0, 64], sizes = [8, 32], strides = [1, 1]} : vector<8x96xf32> to vector<8x32xf32>
    %44 = vector.extract_strided_slice %34 {offsets = [0, 96], sizes = [8, 32], strides = [1, 1]} : vector<8x128xf32> to vector<8x32xf32>
    %45 = math.tanh %44 : vector<8x32xf32>
    %46 = arith.mulf %42, %21 : vector<8x32xf32>
    %47 = arith.mulf %41, %45 : vector<8x32xf32>
    %48 = arith.addf %46, %47 : vector<8x32xf32>
    %49 = math.tanh %48 : vector<8x32xf32>
    %50 = arith.mulf %43, %49 : vector<8x32xf32>
    %cst_14 = arith.constant dense<0.000000e+00> : vector<32xf32>
    %51 = vector.multi_reduction <add>, %50, %cst_14 [0] : vector<8x32xf32> to vector<32xf32>
    %52 = arith.index_cast %c1_i32 : i32 to index
    %c0_15 = arith.constant 0 : index
    %53 = vector.load %arg6[%52, %c0_15] : memref<2x32xf32, #tpu.memory_space<vmem>>, vector<1x32xf32>
    %54 = vector.shape_cast %53 : vector<1x32xf32> to vector<32xf32>
    %55 = vector.shape_cast %51 : vector<32xf32> to vector<1x32xf32>
    tpu.vector_store %arg6[%52, %c0_15], %55 {strides = array<i32>} : memref<2x32xf32, #tpu.memory_space<vmem>>, vector<1x32xf32>,
    %c2_i32 = arith.constant 2 : i32
    %c0_16 = arith.constant 0 : index
    %c0_17 = arith.constant 0 : index
    %56 = vector.load %arg6[%c0_16, %c0_17] : memref<2x32xf32, #tpu.memory_space<vmem>>, vector<2x32xf32>
    %c0_18 = arith.constant 0 : index
    %c0_19 = arith.constant 0 : index
    %57 = vector.load %arg3[%c0_18, %c0_19] : memref<32x128xf32, #tpu.memory_space<vmem>>, vector<32x128xf32>
    %cst_20 = arith.constant dense<0.000000e+00> : vector<2x128xf32>
    %58 = tpu.matmul %56, %57, %cst_20 {dimension_numbers = #tpu.dot_dimension_numbers<[1], [0], [0], [1], [0, 0, 1, 1], [], []>} : vector<2x32xf32>, vector<32x128xf32>, vector<2x128xf32> -> vector<2x128xf32>
    %c0_21 = arith.constant 0 : index
    %c0_22 = arith.constant 0 : index
    %59 = vector.load %arg4[%c0_21, %c0_22] : memref<1x128xf32, #tpu.memory_space<vmem>>, vector<1x128xf32>
    %cst_23 = arith.constant 8.000000e+00 : f32
    %60 = vector.broadcast %cst_23 : f32 to vector<1x128xf32>
    %61 = arith.mulf %60, %59 : vector<1x128xf32>
    %62 = vector.broadcast %61 : vector<1x128xf32> to vector<2x128xf32>
    %63 = arith.addf %58, %62 : vector<2x128xf32>
    %c0_24 = arith.constant 0 : index
    %c0_25 = arith.constant 0 : index
    %c0_26 = arith.constant 0 : index
    %64 = vector.load %arg5[%c0_24, %c0_25, %c0_26] : memref<1x2x128xf32, #tpu.memory_space<vmem>>, vector<1x2x128xf32>
    %65 = vector.shape_cast %64 : vector<1x2x128xf32> to vector<2x128xf32>
    %66 = vector.shape_cast %63 : vector<2x128xf32> to vector<1x2x128xf32>
    tpu.vector_store %arg5[%c0_24, %c0_25, %c0_26], %66 {strides = array<i32>} : memref<1x2x128xf32, #tpu.memory_space<vmem>>, vector<1x2x128xf32>,
    return
  }
  func.func @transform_0(%arg0: i32) -> (i32, i32, i32) {
    %c0_i32 = arith.constant 0 : i32
    %c0_i32_0 = arith.constant 0 : i32
    %c0_i32_1 = arith.constant 0 : i32
    return %c0_i32, %arg0, %c0_i32_0 : i32, i32, i32
  }
  func.func @transform_1(%arg0: i32) -> (i32, i32) {
    %c0_i32 = arith.constant 0 : i32
    %c0_i32_0 = arith.constant 0 : i32
    %c0_i32_1 = arith.constant 0 : i32
    return %c0_i32, %c0_i32_0 : i32, i32
  }
  func.func @transform_2(%arg0: i32) -> (i32, i32) {
    %c0_i32 = arith.constant 0 : i32
    %c0_i32_0 = arith.constant 0 : i32
    %c0_i32_1 = arith.constant 0 : i32
    return %c0_i32, %c0_i32_0 : i32, i32
  }
  func.func @transform_3(%arg0: i32) -> (i32, i32) {
    %c0_i32 = arith.constant 0 : i32
    %c0_i32_0 = arith.constant 0 : i32
    %c0_i32_1 = arith.constant 0 : i32
    return %c0_i32, %c0_i32_0 : i32, i32
  }
  func.func @transform_4(%arg0: i32) -> (i32, i32, i32) {
    %c0_i32 = arith.constant 0 : i32
    %c0_i32_0 = arith.constant 0 : i32
    %c0_i32_1 = arith.constant 0 : i32
    return %arg0, %c0_i32, %c0_i32_0 : i32, i32, i32
  }
}

</mosaic_0001>

<bundles_post_ra>
// kernel: tpu_custom_call.1
= control target key start
LH: loop header
LB: loop body
LE: loop exit
PB: predicated region body
PF: predicated region fallthrough
CT: control target
= control target key end

     0   :  { %9 = vsyncpa [#allocation4], 0  ;;  %s716_s0 = inlined_call_operand.hbm [shape: f32[2,8,128], index: 0, kind: input, shape index: {}]   ;;  %s717_s1 = inlined_call_operand.hbm [shape: f32[32,128], index: 1, kind: input, shape index: {}]   ;;  %s718_s2 = inlined_call_operand.hbm [shape: f32[32,128], index: 2, kind: input, shape index: {}]   ;;  %s719_s3 = inlined_call_operand.vmem [shape: f32[1,128], index: 3, kind: input, shape index: {}]   ;;  %s720_s4 = inlined_call_operand.hbm [shape: f32[1,2,128], index: 4, kind: output, shape index: {}]  }
   0x1   :  { %10 = vsyncpa [#allocation7], 0 }
   0x2   :  { %11 = vsyncpa [#allocation5], 0  ;;  %s589_s15 = smov [#allocation6]   ;;  %s590_s17 = smov [#allocation3]  }
   0x3   :  { %s29_s16 = sshll.u32 %s589_s15, 4  ;;  %s17_s18 = sshll.u32 %s590_s17, 4  ;;  %s30_s16 = int_to_ptr.vmem [resolvable:$true] %s29_s16  ;;  %s625_s18 = int_to_ptr.vmem [resolvable:$true] %s17_s18 }
   0x4   :  { %s495_s21 = scalar_lea.hbm %s717_s1, 512 }
   0x5   :  { %p496_p0 = scmp.ne.s32.totalorder %s717_s1, %s495_s21  ;;  %p499_p1 = scmp.lt.u32.totalorder %s495_s21, %s717_s1 }
   0x7   :  { %p501_p2 = pnand %p499_p1, %p496_p0 }
   0x9   :  { %504 = shalt.err (!%p501_p2)
}
   0xa   :  { %s505_s26 = scalar_lea.vmem %s30_s16, 512  ;;  %p510_p4 = scmp.lt.s32.totalorder %s30_s16, %s30_s16 }
   0xb   :  { %p506_p3 = scmp.ne.s32.totalorder %s30_s16, %s505_s26  ;;  %p511_p5 = scmp.lt.s32.totalorder %s505_s26, %s505_s26 }
   0xd   :  { %p512_p6 = por %p511_p5, %p510_p4 }
   0xf   :  { %p513_p7 = pnand %p512_p6, %p506_p3 }
  0x11   :  { %516 = shalt.err (!%p513_p7)
}
  0x12   :  { %s591_s27 = smov 128   ;;  %s592_s28 = smov 8  }
  0x13   :  { %35 = dma.hbm_to_vmem [thread:$0]  %s717_s1, 512, %s30_s16, [#allocation7], %s591_s27, %s591_s27, %s592_s28  }
  0x14   :  { %s517_s7 = scalar_lea.hbm %s716_s0, 256 }
  0x15   :  { %p518_p8 = scmp.ne.s32.totalorder %s716_s0, %s517_s7  ;;  %p521_p9 = scmp.lt.u32.totalorder %s517_s7, %s716_s0 }
  0x17   :  { %p523_p10 = pnand %p521_p9, %p518_p8 }
  0x19   :  { %526 = shalt.err (!%p523_p10)
}
  0x1a   :  { %s527_s12 = scalar_lea.vmem %s625_s18, 256  ;;  %p532_p12 = scmp.lt.s32.totalorder %s625_s18, %s625_s18 }
  0x1b   :  { %p528_p11 = scmp.ne.s32.totalorder %s625_s18, %s527_s12  ;;  %p533_p13 = scmp.lt.s32.totalorder %s527_s12, %s527_s12 }
  0x1d   :  { %p534_p0 = por %p533_p13, %p532_p12 }
  0x1f   :  { %p535_p1 = pnand %p534_p0, %p528_p11 }
  0x21   :  { %538 = shalt.err (!%p535_p1)
}
  0x22   :  { %23 = dma.hbm_to_vmem [thread:$0]  %s716_s0, 256, %s625_s18, [#allocation4], %s591_s27, %s591_s27, %s592_s28  }
  0x23   :  { %s593_s14 = smov [#allocation8]   ;;  %s539_s19 = scalar_lea.hbm %s718_s2, 512 }
  0x24   :  { %s41_s15 = sshll.u32 %s593_s14, 4  ;;  %p540_p2 = scmp.ne.s32.totalorder %s718_s2, %s539_s19  ;;  %s42_s15 = int_to_ptr.vmem [resolvable:$true] %s41_s15 }
  0x25   :  { %p543_p3 = scmp.lt.u32.totalorder %s539_s19, %s718_s2 }
  0x27   :  { %p545_p4 = pnand %p543_p3, %p540_p2 }
  0x29   :  { %548 = shalt.err (!%p545_p4)
}
  0x2a   :  { %s549_s24 = scalar_lea.vmem %s42_s15, 512  ;;  %p554_p6 = scmp.lt.s32.totalorder %s42_s15, %s42_s15 }
  0x2b   :  { %p550_p5 = scmp.ne.s32.totalorder %s42_s15, %s549_s24  ;;  %p555_p7 = scmp.lt.s32.totalorder %s549_s24, %s549_s24 }
  0x2d   :  { %p556_p8 = por %p555_p7, %p554_p6 }
  0x2f   :  { %p557_p9 = pnand %p556_p8, %p550_p5 }
  0x31   :  { %560 = shalt.err (!%p557_p9)
}
  0x32   :  { %47 = dma.hbm_to_vmem [thread:$0]  %s718_s2, 512, %s42_s15, [#allocation7], %s591_s27, %s591_s27, %s592_s28  }
  0x33   :  { %583 = dma.done.wait [#allocation4], 256  }
  0x34   :  { %584 = vsyncadd [#allocation4], 4294967040 }
  0x35   :  { %585 = dma.done.wait [#allocation7], 1024  }
  0x36   :  { %586 = vsyncadd [#allocation7], 4294966272  ;;  %v594_v0 = vmov 0.0|0.0   ;;  %vm595_vm0 = vmmov 0   ;;  %v596_v1 = vmov 0.0   ;;  %v60_v2 = vld [vmem:[#allocation6] sm:$0xff] }
  0x37   :  { %450 = vmatprep.subr.bf16.mxu0 %v594_v0  ;;  %425 = vmatprep.mubr.msk.f32.mxu0 %vm595_vm0, %v596_v1  ;;  %v61_v3 = vld [vmem:[#allocation6 + $0x8] sm:$0xff]  ;;  %v62_v4 = vld [vmem:[#allocation6 + $0x10] sm:$0xff]  ;;  %v63_v6 = vld [vmem:[#allocation6 + $0x18] sm:$0xff]  ;;  %s597_s2 = smov 32   ;;  %s598_s25 = smov 64   ;;  %vm64_vm1 = vcmask 261120  }
  0x38   :  { %456 = vmatprep.subr.bf16.mxu1 %v594_v0  ;;  %436 = vmatprep.mubr.msk.f32.mxu1 %vm595_vm0, %v596_v1  ;;  %v451_v5 = vpack.c.bf16 %v61_v3, %v60_v2  ;;  %v454_v7 = vpack.c.bf16 %v63_v6, %v62_v4  ;;  %v59_v8 = vld [vmem:[#allocation3] sm:$0xff]  ;;  %v178_v26 = vld [vmem:[#allocation3 + $0x8] sm:$0xff]  ;;  %vm163_vm2 = vcmask 785920   ;;  %vm175_vm3 = vcmask 253952   ;;  %v296_v51 = vld [vmem:[#allocation8] sm:$0xff]  ;;  %s599_s28 = smov [#allocation9]  }
  0x39   :  { %v297_v52 = vld [vmem:[#allocation8 + $0x8] sm:$0xff]  ;;  %v298_v55 = vld [vmem:[#allocation8 + $0x10] sm:$0xff]  ;;  %v299_v56 = vld [vmem:[#allocation8 + $0x18] sm:$0xff]  ;;  %v303_v3 = vlaneseq  ;;  %s388_s29 = sshll.u32 %s599_s28, 4  ;;  %s389_s29 = int_to_ptr.vmem [resolvable:$true] %s388_s29 }
  0x3a   :  { %452 = vmatpush3.bf16.msra.mxu0 %v451_v5  ;;  %458 = vmatpush3.bf16.msra.mxu1 %v451_v5  ;;  %v463_v53 = vpack.c.bf16 %v297_v52, %v296_v51  ;;  %v466_v58 = vpack.c.bf16 %v299_v56, %v298_v55  ;;  %s561_s30 = scalar_lea.vmem %s389_s29, 32  ;;  %p566_p11 = scmp.lt.s32.totalorder %s389_s29, %s389_s29 }
  0x3b   :  { %453 = vmatprep.subr.bf16.mxu0 %v594_v0  ;;  %459 = vmatprep.subr.bf16.mxu1 %v594_v0  ;;  %v304_v4 = vshrl.u32 %v303_v3, 7  ;;  %p562_p10 = scmp.ne.s32.totalorder %s389_s29, %s561_s30  ;;  %p567_p12 = scmp.lt.s32.totalorder %s561_s30, %s561_s30 }
  0x3d   :  { %v305_v6 = vsub.s32 0, %v304_v4  ;;  %p568_p13 = por %p567_p12, %p566_p11 }
  0x3e   :  { %455 = vmatpush3.bf16.msra.mxu0 %v454_v7  ;;  %461 = vmatpush3.bf16.msra.mxu1 %v454_v7 }
  0x3f   :  { %462 = vmatprep.subr.bf16.mxu0 %v594_v0  ;;  %p569_p0 = pnand %p568_p13, %p562_p10 }
  0x41   :  { %426 = vmatmul.mubr.f32.vlgmr.msra.gmra.mrb[0].mxu0 %v596_v1 }
  0x42   :  { %447 = vmatprep.mubr.msk.f32.mxu0 %vm595_vm0, %v596_v1  ;;  %464 = vmatpush3.bf16.msra.mxu0 %v463_v53 }
  0x43   :  { %465 = vmatprep.subr.bf16.mxu0 %v594_v0  ;;  %v300_v0 = vld [vmem:[%s719_s3] sm:$0x1] }
  0x44   :  { %v301_v5 = vmul.f32 8.0, %v300_v0 }
  0x46   :  { %467 = vmatpush3.bf16.msra.mxu0 %v466_v58  ;;  %v306_v7 = vrot.slane %v301_v5, %v305_v6 }
 0x114   :  { %v134_v9 = vpop.f32.mrb[0].mxu0 }
 0x115   :  { %v138_v10 = vadd.f32 %v134_v9, %v59_v8  ;;  %v427_v11 = vpop.f32.mrb[1].mxu0 }
 0x117   :  { %479 = vtanh.f32 %v138_v10  ;;  %v398_v13 = vmul.f32 -1.442695, %v138_v10 }
 0x119   :  { %481 = vpow2.f32 %v398_v13 }
 0x121   :  { %v480_v12 = vpop.eup %479 }
 0x122   :  { %148 = vrot.lane.b32.xlu0 %v480_v12, %s597_s2 }
 0x123   :  { %v482_v14 = vpop.eup %481 }
 0x124   :  { %v142_v15 = vadd.f32 1.0, %v482_v14 }
 0x126   :  { %483 = vrcp.f32 %v142_v15 }
 0x130   :  { %v484_v16 = vpop.eup %483 }
 0x131   :  { %v146_v19 = vmul.f32 0.0, %v484_v16 }
 0x194   :  { %v149_v17 = vpop.permute.xlu0 %148 }
 0x195   :  { %v151_v18 = vmul.f32 %v484_v16, %v149_v17 }
 0x197   :  { %153 = vrot.lane.b32.xlu0 %v151_v18, %s597_s2 }
 0x209   :  { %v154_v20 = vpop.permute.xlu0 %153 }
 0x20a   :  { %v156_v21 = vadd.f32 %v154_v20, %v146_v19 }
 0x20c   :  { %485 = vtanh.f32 %v156_v21 }
 0x216   :  { %v486_v22 = vpop.eup %485 }
 0x217   :  { %159 = vrot.lane.b32.xlu1 %v486_v22, %s597_s2 }
 0x289   :  { %v160_v23 = vpop.permute.xlu1 %159 }
 0x28a   :  { %v162_v24 = vmul.f32 %v484_v16, %v160_v23 }
 0x28c   :  { %184 = vrot.lane.b32.xlu1 %v162_v24, %s598_s25  ;;  %v164_v32 = vsel %vm163_vm2, %v162_v24, 0.0 }
 0x28d   :  { %v165_v34 = vrot.slane %v164_v32, 4 }
 0x28f   :  { %v166_v36 = vadd.f32 %v165_v34, %v164_v32 }
 0x291   :  { %v167_v37 = vrot.slane %v166_v36, 2 }
 0x293   :  { %v168_v38 = vadd.f32 %v167_v37, %v166_v36 }
 0x295   :  { %v169_v42 = vrot.slane %v168_v38, 1 }
 0x297   :  { %v170_v43 = vadd.f32 %v169_v42, %v168_v38 }
 0x2fe   :  { %v185_v25 = vpop.permute.xlu1 %184 }
 0x2ff   :  { %437 = vmatmul.mubr.msk.f32.vlgmr.msra.gmra.mrb[0].mxu1 %vm64_vm1, %v185_v25 }
 0x3d2   :  { %v254_v27 = vpop.f32.mrb[0].mxu1 }
 0x3d3   :  { %v258_v28 = vadd.f32 %v254_v27, %v178_v26  ;;  %v438_v29 = vpop.f32.mrb[1].mxu1 }
 0x3d5   :  { %487 = vtanh.f32 %v258_v28  ;;  %v400_v31 = vmul.f32 -1.442695, %v258_v28 }
 0x3d7   :  { %489 = vpow2.f32 %v400_v31 }
 0x3df   :  { %v488_v30 = vpop.eup %487 }
 0x3e0   :  { %268 = vrot.lane.b32.xlu0 %v488_v30, %s597_s2 }
 0x3e1   :  { %v490_v33 = vpop.eup %489 }
 0x3e2   :  { %v262_v35 = vadd.f32 1.0, %v490_v33 }
 0x3e4   :  { %491 = vrcp.f32 %v262_v35 }
 0x3ee   :  { %v492_v39 = vpop.eup %491 }
 0x3ef   :  { %v266_v44 = vmul.f32 %v492_v39, %v156_v21 }
 0x452   :  { %v269_v40 = vpop.permute.xlu0 %268 }
 0x453   :  { %v271_v41 = vmul.f32 %v492_v39, %v269_v40 }
 0x455   :  { %273 = vrot.lane.b32.xlu1 %v271_v41, %s597_s2 }
 0x459   :  { %172 = vrot.lane.b32.xlu1 %v170_v43, %s598_s25 }
 0x4c7   :  { %v274_v45 = vpop.permute.xlu1 %273 }
 0x4c8   :  { %v276_v46 = vadd.f32 %v274_v45, %v266_v44 }
 0x4ca   :  { %493 = vtanh.f32 %v276_v46 }
 0x4cb   :  { %v173_v47 = vpop.permute.xlu1 %172 }
 0x4cc   :  { %176 = vst.msk [vmem:[#allocation2] sm:$0x1] %vm175_vm3, %v173_v47 }
 0x4d4   :  { %v494_v48 = vpop.eup %493 }
 0x4d5   :  { %279 = vrot.lane.b32.xlu0 %v494_v48, %s597_s2 }
 0x547   :  { %v280_v49 = vpop.permute.xlu0 %279 }
 0x548   :  { %v282_v50 = vmul.f32 %v492_v39, %v280_v49 }
 0x54a   :  { %v283_v54 = vsel %vm163_vm2, %v282_v50, 0.0 }
 0x54b   :  { %v284_v57 = vrot.slane %v283_v54, 4 }
 0x54d   :  { %v285_v59 = vadd.f32 %v284_v57, %v283_v54 }
 0x54f   :  { %v286_v60 = vrot.slane %v285_v59, 2 }
 0x551   :  { %v287_v61 = vadd.f32 %v286_v60, %v285_v59 }
 0x553   :  { %v288_v62 = vrot.slane %v287_v61, 1 }
 0x555   :  { %v289_v63 = vadd.f32 %v288_v62, %v287_v61 }
 0x557   :  { %291 = vrot.lane.b32.xlu0 %v289_v63, %s598_s25 }
 0x5c9   :  { %v292_v1 = vpop.permute.xlu0 %291 }
 0x5ca   :  { %294 = vst.msk [vmem:[#allocation2 + $0x1] sm:$0x1] %vm175_vm3, %v292_v1 }
 0x5d1   :  { %v295_v2 = vld [vmem:[#allocation2] sm:$0x3] }
 0x5d2   :  { %448 = vmatmul.mubr.msk.f32.vlgmr.msra.gmra.mrb[2].mxu0 %vm64_vm1, %v295_v2 }
 0x6a5   :  { %v377_v8 = vpop.f32.mrb[2].mxu0 }
 0x6a6   :  { %v378_v9 = vadd.f32 %v377_v8, %v306_v7  ;;  %v449_v10 = vpop.f32.mrb[3].mxu0 }
 0x6a8   :  { %381 = vst [vmem:[#allocation9] sm:$0x3] %v378_v9 }
 0x6a9   :  { %572 = shalt.err (!%p569_p0)
}
 0x6aa   :  { %s573_s3 = scalar_lea.hbm %s720_s4, 32 }
 0x6ab   :  { %p574_p1 = scmp.ne.s32.totalorder %s720_s4, %s573_s3  ;;  %p577_p2 = scmp.lt.u32.totalorder %s573_s3, %s720_s4 }
 0x6ad   :  { %p579_p3 = pnand %p577_p2, %p574_p1 }
 0x6af   :  { %582 = shalt.err (!%p579_p3)
}
 0x6b0   :  { %391 = dma.vmem_to_hbm [thread:$0]  %s389_s29, 32, %s720_s4, [#allocation5]  }
 0x6b1   :  { %587 = dma.done.wait [#allocation5], 32  }
 0x6b2   :  { %588 = vsyncadd [#allocation5], 4294967264 }
 0x6b3   :  { %395 = vsyncpa [#allocation4], 1 }
 0x6b4   :  { %396 = vsyncpa [#allocation7], 1 }
 0x6b5   :  { %397 = vsyncpa [#allocation5], 1 }

</bundles_post_ra>
